<compile_context>
chip_gen: v7x
topology: tpu7x:2x2x1
jax: 0.10.0
libtpu: 0.0.40
codegen_flags: <defaults>
</compile_context>

<pallas_src>
import functools

import jax
import jax.numpy as jnp
from jax.experimental import pallas as pl
from jax.experimental.pallas import tpu as pltpu

# Model dims (d must be 784 because forward() does x.view(-1, 784)).
D, H1, H2, H3, H4, NCLS = 784, 256, 128, 128, 64, 10
H4_PAD = 128    # layer-4 activation padded to a full 128-lane tile
NOUT_PAD = 128  # last layer padded to a full 128-lane output tile
# Batch-tile cap: f32 x tiles at TB=1024 are ~3.2 MB/buffer; with double-buffered x/out
# and resident bf16 weights the per-step footprint is ~9 MB -- safe on every generation.
MAX_TB = 1024
VMEM_LIMIT_BYTES = 32 * 1024 * 1024


def _round_up(x, m):
    return ((x + m - 1) // m) * m


def _choose_grid(batch):
    """Pick (batch_tile, grid_steps).

    Tiles are multiples of 16 (bf16 sublane packing). Whenever the batch exceeds one
    tile we keep the step count even so v7x's two TensorCores split the parallel grid
    evenly; v5e/v6e (1 TC) are unaffected.
    """
    if batch <= 16:
        return _round_up(batch, 16), 1
    if batch <= 2 * MAX_TB:
        tb = _round_up(pl.cdiv(batch, 2), 16)
        return tb, pl.cdiv(batch, tb)          # always 2 steps here
    steps = _round_up(pl.cdiv(batch, MAX_TB), 2)   # even step count for v7x megacore
    tb = _round_up(pl.cdiv(batch, steps), 16)
    return tb, steps


def mlp_kernel(x_ref,
               w1_ref, b1_ref,
               w2_ref, b2_ref,
               w3_ref, b3_ref,
               w4_ref, b4_ref,
               w5_ref, b5_ref,
               o_ref):
    # Matmuls hit the MXU with bf16 inputs and f32 accumulation; the f32->bf16 input
    # cast, bias-add and ReLU run on the VPU (huge slack -- this kernel is DMA / per-step
    # overhead bound); activations are re-cast to bf16 only as inputs to the next matmul.
    def layer(h_bf16, w_ref, b_ref):
        return jnp.dot(h_bf16, w_ref[...], preferred_element_type=jnp.float32) + b_ref[...]

    x = x_ref[...].astype(jnp.bfloat16)
    h = jnp.maximum(layer(x, w1_ref, b1_ref), 0.0).astype(jnp.bfloat16)
    h = jnp.maximum(layer(h, w2_ref, b2_ref), 0.0).astype(jnp.bfloat16)
    h = jnp.maximum(layer(h, w3_ref, b3_ref), 0.0).astype(jnp.bfloat16)
    h = jnp.maximum(layer(h, w4_ref, b4_ref), 0.0).astype(jnp.bfloat16)
    o_ref[...] = layer(h, w5_ref, b5_ref).astype(o_ref.dtype)


def _pallas_forward(x_pad, weights, biases, tb):
    b_pad = x_pad.shape[0]
    grid = (b_pad // tb,)

    def const_spec(arr):
        # Constant index map: the block never changes across the grid, so the pipeline
        # keeps the weight/bias block resident in VMEM.
        return pl.BlockSpec(arr.shape, lambda i: (0,) * arr.ndim)

    in_specs = [pl.BlockSpec((tb, D), lambda i: (i, 0))]   # batch tile of x (f32)
    operands = [x_pad]
    for w, b in zip(weights, biases):
        in_specs += [const_spec(w), const_spec(b)]
        operands += [w, b]

    flops = 2 * b_pad * (D * H1 + H1 * H2 + H2 * H3 + H3 * H4_PAD + H4_PAD * NOUT_PAD)
    bytes_accessed = (int(x_pad.size) * x_pad.dtype.itemsize
                      + sum(int(a.size) * a.dtype.itemsize for a in operands[1:])
                      + b_pad * NOUT_PAD * 4)

    return pl.pallas_call(
        mlp_kernel,
        out_shape=jax.ShapeDtypeStruct((b_pad, NOUT_PAD), jnp.float32),
        grid_spec=pltpu.PrefetchScalarGridSpec(
            num_scalar_prefetch=0,
            grid=grid,
            in_specs=in_specs,
            out_specs=pl.BlockSpec((tb, NOUT_PAD), lambda i: (i, 0)),
        ),
        compiler_params=pltpu.CompilerParams(
            dimension_semantics=("parallel",),
            vmem_limit_bytes=VMEM_LIMIT_BYTES),
        cost_estimate=pl.CostEstimate(flops=flops, transcendentals=0,
                                      bytes_accessed=int(bytes_accessed)),
    )(*operands)


@functools.partial(jax.jit, static_argnames=("tb", "b_pad"))
def _forward_jit(x_nchw, weights, biases, tb, b_pad):
    batch = x_nchw.shape[0]
    x = x_nchw.reshape(-1, D)                       # == x.view(-1, 784), stays f32
    if b_pad != batch:
        x = jnp.pad(x, ((0, b_pad - batch), (0, 0)))
    out = _pallas_forward(x, weights, biases, tb)
    return out[:batch, :NCLS]                       # slice fused under the same jit


def prepare_params(params):
    """One-time parameter prep: bf16 matmul weights (stored (in, out)), f32 biases,
    H4 padded 64->128 and the last layer padded 10->128 output lanes. Padding columns
    of layer 4 get zero weight+bias -> ReLU(0)=0, and the padded rows of w5 are zero,
    so the padded network is numerically identical on the first NCLS outputs."""
    (w1, b1), (w2, b2), (w3, b3), (w4, b4), (w5, b5) = params
    w4p = jnp.pad(w4, ((0, 0), (0, H4_PAD - H4)))
    b4p = jnp.pad(b4, ((0, 0), (0, H4_PAD - H4)))
    w5p = jnp.pad(w5, ((0, H4_PAD - H4), (0, NOUT_PAD - NCLS)))
    b5p = jnp.pad(b5, ((0, 0), (0, NOUT_PAD - NCLS)))
    weights = tuple(w.astype(jnp.bfloat16) for w in (w1, w2, w3, w4p, w5p))
    biases = tuple(b.astype(jnp.float32) for b in (b1, b2, b3, b4p, b5p))
    return weights, biases


def neural_net_forward(x_nchw, prepared_params, tb=None):
    """Forward pass of NeuralNet. x_nchw: (B, 1, 28, 28) f32 -> (B, NCLS) f32 logits."""
    weights, biases = prepared_params
    batch = x_nchw.shape[0]
    if tb is None:
        tb, steps = _choose_grid(batch)
    else:
        steps = pl.cdiv(batch, tb)
    b_pad = tb * steps
    return _forward_jit(x_nchw, weights, biases, tb, b_pad)


def init_params(key):
    """Deterministic init mimicking nn.Linear default: U(-1/sqrt(fan_in), 1/sqrt(fan_in)).
    Weights stored as (in, out), biases as (1, out)."""
    dims = [(D, H1), (H1, H2), (H2, H3), (H3, H4), (H4, NCLS)]
    params = []
    for (fan_in, fan_out) in dims:
        key, kw, kb = jax.random.split(key, 3)
        bound = 1.0 / jnp.sqrt(fan_in)
        w = jax.random.uniform(kw, (fan_in, fan_out), jnp.float32, -bound, bound)
        b = jax.random.uniform(kb, (1, fan_out), jnp.float32, -bound, bound)
        params.append((w, b))
    return params


def reference_forward(x_nchw, params):
    x = x_nchw.reshape(-1, D)
    for i, (w, b) in enumerate(params):
        x = x @ w + b
        if i < len(params) - 1:
            x = jnp.maximum(x, 0.0)
    return x


if __name__ == "__main__":
    key = jax.random.PRNGKey(0)
    key, kx1, kx2 = jax.random.split(key, 3)
    params = init_params(key)
    prepared = prepare_params(params)   # one-time: bf16 cast + H4/NCLS lane padding

    # batch=8  : single 16-row tile, exercises batch padding (8 -> 16).
    # batch=40 : tb=32, 2 parallel grid steps, padded 40 -> 64.
    for batch, kx in ((8, kx1), (40, kx2)):
        x = jax.random.normal(kx, (batch, 1, 28, 28), jnp.float32)
        out = jax.block_until_ready(neural_net_forward(x, prepared))
        ref = reference_forward(x, params)
        assert out.shape == (batch, NCLS)
        # bf16 matmul inputs with f32 accumulation vs. a pure-f32 reference -> loosened tol.
        assert jnp.allclose(out, ref, atol=2e-2, rtol=2e-2), \
            f"mismatch vs pure-JAX reference (batch={batch})"

    print("KERNEL_OK")
</pallas_src>

<mosaic_0001>
module attributes {stable_mosaic.version = 11 : i64} {
  func.func @mlp_kernel(%arg0: i32, %arg1: memref<16x784xf32, #tpu.memory_space<vmem>>, %arg2: memref<784x256xbf16, #tpu.memory_space<vmem>>, %arg3: memref<1x256xf32, #tpu.memory_space<vmem>>, %arg4: memref<256x128xbf16, #tpu.memory_space<vmem>>, %arg5: memref<1x128xf32, #tpu.memory_space<vmem>>, %arg6: memref<128x128xbf16, #tpu.memory_space<vmem>>, %arg7: memref<1x128xf32, #tpu.memory_space<vmem>>, %arg8: memref<128x128xbf16, #tpu.memory_space<vmem>>, %arg9: memref<1x128xf32, #tpu.memory_space<vmem>>, %arg10: memref<128x128xbf16, #tpu.memory_space<vmem>>, %arg11: memref<1x128xf32, #tpu.memory_space<vmem>>, %arg12: memref<16x128xf32, #tpu.memory_space<vmem>>) attributes {dimension_semantics = [#tpu.dimension_semantics<parallel>], iteration_bounds = array<i64: 1>, scalar_prefetch = 0 : i64, scratch_operands = 0 : i64, tpu.core_type = #tpu.core_type<tc>, window_params = [{transform_indices = @transform_0, window_bounds = array<i64: 16, 784>}, {pipeline_mode = #tpu.pipeline_mode<synchronous>, transform_indices = @transform_1, window_bounds = array<i64: 784, 256>}, {pipeline_mode = #tpu.pipeline_mode<synchronous>, transform_indices = @transform_2, window_bounds = array<i64: 1, 256>}, {pipeline_mode = #tpu.pipeline_mode<synchronous>, transform_indices = @transform_3, window_bounds = array<i64: 256, 128>}, {pipeline_mode = #tpu.pipeline_mode<synchronous>, transform_indices = @transform_4, window_bounds = array<i64: 1, 128>}, {pipeline_mode = #tpu.pipeline_mode<synchronous>, transform_indices = @transform_5, window_bounds = array<i64: 128, 128>}, {pipeline_mode = #tpu.pipeline_mode<synchronous>, transform_indices = @transform_6, window_bounds = array<i64: 1, 128>}, {pipeline_mode = #tpu.pipeline_mode<synchronous>, transform_indices = @transform_7, window_bounds = array<i64: 128, 128>}, {pipeline_mode = #tpu.pipeline_mode<synchronous>, transform_indices = @transform_8, window_bounds = array<i64: 1, 128>}, {pipeline_mode = #tpu.pipeline_mode<synchronous>, transform_indices = @transform_9, window_bounds = array<i64: 128, 128>}, {pipeline_mode = #tpu.pipeline_mode<synchronous>, transform_indices = @transform_10, window_bounds = array<i64: 1, 128>}, {transform_indices = @transform_11, window_bounds = array<i64: 16, 128>}]} {
    %c0 = arith.constant 0 : index
    %c0_0 = arith.constant 0 : index
    %0 = vector.load %arg1[%c0, %c0_0] : memref<16x784xf32, #tpu.memory_space<vmem>>, vector<16x784xf32>
    %1 = arith.truncf %0 : vector<16x784xf32> to vector<16x784xbf16>
    %c0_1 = arith.constant 0 : index
    %c0_2 = arith.constant 0 : index
    %2 = vector.load %arg2[%c0_1, %c0_2] : memref<784x256xbf16, #tpu.memory_space<vmem>>, vector<784x256xbf16>
    %cst = arith.constant dense<0.000000e+00> : vector<16x256xf32>
    %3 = tpu.matmul %1, %2, %cst {dimension_numbers = #tpu.dot_dimension_numbers<[1], [0], [0], [1], [0, 0, 1, 1], [], []>} : vector<16x784xbf16>, vector<784x256xbf16>, vector<16x256xf32> -> vector<16x256xf32>
    %c0_3 = arith.constant 0 : index
    %c0_4 = arith.constant 0 : index
    %4 = vector.load %arg3[%c0_3, %c0_4] : memref<1x256xf32, #tpu.memory_space<vmem>>, vector<1x256xf32>
    %5 = vector.broadcast %4 : vector<1x256xf32> to vector<16x256xf32>
    %6 = arith.addf %3, %5 : vector<16x256xf32>
    %cst_5 = arith.constant 0.000000e+00 : f32
    %7 = vector.broadcast %cst_5 : f32 to vector<16x256xf32>
    %8 = arith.maximumf %6, %7 : vector<16x256xf32>
    %9 = arith.truncf %8 : vector<16x256xf32> to vector<16x256xbf16>
    %c0_6 = arith.constant 0 : index
    %c0_7 = arith.constant 0 : index
    %10 = vector.load %arg4[%c0_6, %c0_7] : memref<256x128xbf16, #tpu.memory_space<vmem>>, vector<256x128xbf16>
    %cst_8 = arith.constant dense<0.000000e+00> : vector<16x128xf32>
    %11 = tpu.matmul %9, %10, %cst_8 {dimension_numbers = #tpu.dot_dimension_numbers<[1], [0], [0], [1], [0, 0, 1, 1], [], []>} : vector<16x256xbf16>, vector<256x128xbf16>, vector<16x128xf32> -> vector<16x128xf32>
    %c0_9 = arith.constant 0 : index
    %c0_10 = arith.constant 0 : index
    %12 = vector.load %arg5[%c0_9, %c0_10] : memref<1x128xf32, #tpu.memory_space<vmem>>, vector<1x128xf32>
    %13 = vector.broadcast %12 : vector<1x128xf32> to vector<16x128xf32>
    %14 = arith.addf %11, %13 : vector<16x128xf32>
    %cst_11 = arith.constant 0.000000e+00 : f32
    %15 = vector.broadcast %cst_11 : f32 to vector<16x128xf32>
    %16 = arith.maximumf %14, %15 : vector<16x128xf32>
    %17 = arith.truncf %16 : vector<16x128xf32> to vector<16x128xbf16>
    %c0_12 = arith.constant 0 : index
    %c0_13 = arith.constant 0 : index
    %18 = vector.load %arg6[%c0_12, %c0_13] : memref<128x128xbf16, #tpu.memory_space<vmem>>, vector<128x128xbf16>
    %cst_14 = arith.constant dense<0.000000e+00> : vector<16x128xf32>
    %19 = tpu.matmul %17, %18, %cst_14 {dimension_numbers = #tpu.dot_dimension_numbers<[1], [0], [0], [1], [0, 0, 1, 1], [], []>} : vector<16x128xbf16>, vector<128x128xbf16>, vector<16x128xf32> -> vector<16x128xf32>
    %c0_15 = arith.constant 0 : index
    %c0_16 = arith.constant 0 : index
    %20 = vector.load %arg7[%c0_15, %c0_16] : memref<1x128xf32, #tpu.memory_space<vmem>>, vector<1x128xf32>
    %21 = vector.broadcast %20 : vector<1x128xf32> to vector<16x128xf32>
    %22 = arith.addf %19, %21 : vector<16x128xf32>
    %cst_17 = arith.constant 0.000000e+00 : f32
    %23 = vector.broadcast %cst_17 : f32 to vector<16x128xf32>
    %24 = arith.maximumf %22, %23 : vector<16x128xf32>
    %25 = arith.truncf %24 : vector<16x128xf32> to vector<16x128xbf16>
    %c0_18 = arith.constant 0 : index
    %c0_19 = arith.constant 0 : index
    %26 = vector.load %arg8[%c0_18, %c0_19] : memref<128x128xbf16, #tpu.memory_space<vmem>>, vector<128x128xbf16>
    %cst_20 = arith.constant dense<0.000000e+00> : vector<16x128xf32>
    %27 = tpu.matmul %25, %26, %cst_20 {dimension_numbers = #tpu.dot_dimension_numbers<[1], [0], [0], [1], [0, 0, 1, 1], [], []>} : vector<16x128xbf16>, vector<128x128xbf16>, vector<16x128xf32> -> vector<16x128xf32>
    %c0_21 = arith.constant 0 : index
    %c0_22 = arith.constant 0 : index
    %28 = vector.load %arg9[%c0_21, %c0_22] : memref<1x128xf32, #tpu.memory_space<vmem>>, vector<1x128xf32>
    %29 = vector.broadcast %28 : vector<1x128xf32> to vector<16x128xf32>
    %30 = arith.addf %27, %29 : vector<16x128xf32>
    %cst_23 = arith.constant 0.000000e+00 : f32
    %31 = vector.broadcast %cst_23 : f32 to vector<16x128xf32>
    %32 = arith.maximumf %30, %31 : vector<16x128xf32>
    %33 = arith.truncf %32 : vector<16x128xf32> to vector<16x128xbf16>
    %c0_24 = arith.constant 0 : index
    %c0_25 = arith.constant 0 : index
    %34 = vector.load %arg10[%c0_24, %c0_25] : memref<128x128xbf16, #tpu.memory_space<vmem>>, vector<128x128xbf16>
    %cst_26 = arith.constant dense<0.000000e+00> : vector<16x128xf32>
    %35 = tpu.matmul %33, %34, %cst_26 {dimension_numbers = #tpu.dot_dimension_numbers<[1], [0], [0], [1], [0, 0, 1, 1], [], []>} : vector<16x128xbf16>, vector<128x128xbf16>, vector<16x128xf32> -> vector<16x128xf32>
    %c0_27 = arith.constant 0 : index
    %c0_28 = arith.constant 0 : index
    %36 = vector.load %arg11[%c0_27, %c0_28] : memref<1x128xf32, #tpu.memory_space<vmem>>, vector<1x128xf32>
    %37 = vector.broadcast %36 : vector<1x128xf32> to vector<16x128xf32>
    %38 = arith.addf %35, %37 : vector<16x128xf32>
    %c0_29 = arith.constant 0 : index
    %c0_30 = arith.constant 0 : index
    %39 = vector.load %arg12[%c0_29, %c0_30] : memref<16x128xf32, #tpu.memory_space<vmem>>, vector<16x128xf32>
    tpu.vector_store %arg12[%c0_29, %c0_30], %38 {strides = array<i32>} : memref<16x128xf32, #tpu.memory_space<vmem>>, vector<16x128xf32>,
    return
  }
  func.func @transform_0(%arg0: i32) -> (i32, i32) {
    %c0_i32 = arith.constant 0 : i32
    %c0_i32_0 = arith.constant 0 : i32
    return %arg0, %c0_i32 : i32, i32
  }
  func.func @transform_1(%arg0: i32) -> (i32, i32) {
    %c0_i32 = arith.constant 0 : i32
    %c0_i32_0 = arith.constant 0 : i32
    %c0_i32_1 = arith.constant 0 : i32
    return %c0_i32, %c0_i32_0 : i32, i32
  }
  func.func @transform_2(%arg0: i32) -> (i32, i32) {
    %c0_i32 = arith.constant 0 : i32
    %c0_i32_0 = arith.constant 0 : i32
    %c0_i32_1 = arith.constant 0 : i32
    return %c0_i32, %c0_i32_0 : i32, i32
  }
  func.func @transform_3(%arg0: i32) -> (i32, i32) {
    %c0_i32 = arith.constant 0 : i32
    %c0_i32_0 = arith.constant 0 : i32
    %c0_i32_1 = arith.constant 0 : i32
    return %c0_i32, %c0_i32_0 : i32, i32
  }
  func.func @transform_4(%arg0: i32) -> (i32, i32) {
    %c0_i32 = arith.constant 0 : i32
    %c0_i32_0 = arith.constant 0 : i32
    %c0_i32_1 = arith.constant 0 : i32
    return %c0_i32, %c0_i32_0 : i32, i32
  }
  func.func @transform_5(%arg0: i32) -> (i32, i32) {
    %c0_i32 = arith.constant 0 : i32
    %c0_i32_0 = arith.constant 0 : i32
    %c0_i32_1 = arith.constant 0 : i32
    return %c0_i32, %c0_i32_0 : i32, i32
  }
  func.func @transform_6(%arg0: i32) -> (i32, i32) {
    %c0_i32 = arith.constant 0 : i32
    %c0_i32_0 = arith.constant 0 : i32
    %c0_i32_1 = arith.constant 0 : i32
    return %c0_i32, %c0_i32_0 : i32, i32
  }
  func.func @transform_7(%arg0: i32) -> (i32, i32) {
    %c0_i32 = arith.constant 0 : i32
    %c0_i32_0 = arith.constant 0 : i32
    %c0_i32_1 = arith.constant 0 : i32
    return %c0_i32, %c0_i32_0 : i32, i32
  }
  func.func @transform_8(%arg0: i32) -> (i32, i32) {
    %c0_i32 = arith.constant 0 : i32
    %c0_i32_0 = arith.constant 0 : i32
    %c0_i32_1 = arith.constant 0 : i32
    return %c0_i32, %c0_i32_0 : i32, i32
  }
  func.func @transform_9(%arg0: i32) -> (i32, i32) {
    %c0_i32 = arith.constant 0 : i32
    %c0_i32_0 = arith.constant 0 : i32
    %c0_i32_1 = arith.constant 0 : i32
    return %c0_i32, %c0_i32_0 : i32, i32
  }
  func.func @transform_10(%arg0: i32) -> (i32, i32) {
    %c0_i32 = arith.constant 0 : i32
    %c0_i32_0 = arith.constant 0 : i32
    %c0_i32_1 = arith.constant 0 : i32
    return %c0_i32, %c0_i32_0 : i32, i32
  }
  func.func @transform_11(%arg0: i32) -> (i32, i32) {
    %c0_i32 = arith.constant 0 : i32
    %c0_i32_0 = arith.constant 0 : i32
    return %arg0, %c0_i32 : i32, i32
  }
}

</mosaic_0001>

<bundles_post_ra>
// kernel: _forward_jit.1
= control target key start
LH: loop header
LB: loop body
LE: loop exit
PB: predicated region body
PF: predicated region fallthrough
CT: control target
= control target key end

     0   :  { %16 = vsyncpa [#allocation3], 0  ;;  %s2500_s0 = inlined_call_operand.vmem [shape: f32[16,784], index: 0, kind: input, shape index: {}]   ;;  %s2501_s1 = inlined_call_operand.vmem [shape: bf16[784,256], index: 1, kind: input, shape index: {}]   ;;  %s2502_s2 = inlined_call_operand.vmem [shape: f32[1,256], index: 2, kind: input, shape index: {}]   ;;  %s2503_s3 = inlined_call_operand.vmem [shape: bf16[256,128], index: 3, kind: input, shape index: {}]   ;;  %s2504_s4 = inlined_call_operand.vmem [shape: f32[1,128], index: 4, kind: input, shape index: {}]   ;;  %s2505_s5 = inlined_call_operand.hbm [shape: bf16[128,128], index: 5, kind: input, shape index: {}]   ;;  %s2506_s6 = inlined_call_operand.vmem [shape: f32[1,128], index: 6, kind: input, shape index: {}]   ;;  %s2507_s7 = inlined_call_operand.hbm [shape: bf16[128,128], index: 7, kind: input, shape index: {}]   ;;  %s2508_s8 = inlined_call_operand.vmem [shape: f32[1,128], index: 8, kind: input, shape index: {}]   ;;  %s2509_s9 = inlined_call_operand.hbm [shape: bf16[128,128], index: 9, kind: input, shape index: {}]   ;;  %s2510_s10 = inlined_call_operand.vmem [shape: f32[1,128], index: 10, kind: input, shape index: {}]   ;;  %s2511_s11 = inlined_call_operand.vmem [shape: f32[16,128], index: 11, kind: output, shape index: {}]  }
   0x1   :  { %17 = vsyncpa [#allocation5], 0  ;;  %s1945_s17 = smov [#allocation4]   ;;  %s1946_s19 = smov [#allocation2]  }
   0x2   :  { %s47_s18 = sshll.u32 %s1945_s17, 4  ;;  %s33_s20 = sshll.u32 %s1946_s19, 4  ;;  %s48_s18 = int_to_ptr.vmem [resolvable:$true] %s47_s18  ;;  %s2013_s20 = int_to_ptr.vmem [resolvable:$true] %s33_s20 }
   0x3   :  { %s1875_s23 = scalar_lea.hbm %s2507_s7, 1024 }
   0x4   :  { %p1876_p0 = scmp.ne.s32.totalorder %s2507_s7, %s1875_s23  ;;  %p1879_p1 = scmp.lt.u32.totalorder %s1875_s23, %s2507_s7 }
   0x6   :  { %p1881_p2 = pnand %p1879_p1, %p1876_p0 }
   0x8   :  { %1884 = shalt.err (!%p1881_p2)
}
   0x9   :  { %s1885_s28 = scalar_lea.vmem %s48_s18, 1024  ;;  %p1890_p4 = scmp.lt.s32.totalorder %s48_s18, %s48_s18 }
   0xa   :  { %p1886_p3 = scmp.ne.s32.totalorder %s48_s18, %s1885_s28  ;;  %p1891_p5 = scmp.lt.s32.totalorder %s1885_s28, %s1885_s28 }
   0xc   :  { %p1892_p6 = por %p1891_p5, %p1890_p4 }
   0xe   :  { %p1893_p7 = pnand %p1892_p6, %p1886_p3 }
  0x10   :  { %1896 = shalt.err (!%p1893_p7)
}
  0x11   :  { %s1947_s29 = smov 64   ;;  %s1948_s30 = smov 4  }
  0x12   :  { %53 = dma.hbm_to_vmem [thread:$0]  %s2507_s7, 1024, %s48_s18, [#allocation5], %s1947_s29, %s1947_s29, %s1948_s30  }
  0x13   :  { %s1897_s16 = scalar_lea.hbm %s2505_s5, 1024 }
  0x14   :  { %p1898_p8 = scmp.ne.s32.totalorder %s2505_s5, %s1897_s16  ;;  %p1901_p9 = scmp.lt.u32.totalorder %s1897_s16, %s2505_s5 }
  0x16   :  { %p1903_p10 = pnand %p1901_p9, %p1898_p8 }
  0x18   :  { %1906 = shalt.err (!%p1903_p10)
}
  0x19   :  { %s1907_s23 = scalar_lea.vmem %s2013_s20, 1024  ;;  %p1912_p12 = scmp.lt.s32.totalorder %s2013_s20, %s2013_s20 }
  0x1a   :  { %p1908_p11 = scmp.ne.s32.totalorder %s2013_s20, %s1907_s23  ;;  %p1913_p13 = scmp.lt.s32.totalorder %s1907_s23, %s1907_s23 }
  0x1c   :  { %p1914_p0 = por %p1913_p13, %p1912_p12 }
  0x1e   :  { %p1915_p1 = pnand %p1914_p0, %p1908_p11 }
  0x20   :  { %1918 = shalt.err (!%p1915_p1)
}
  0x21   :  { %39 = dma.hbm_to_vmem [thread:$0]  %s2505_s5, 1024, %s2013_s20, [#allocation3], %s1947_s29, %s1947_s29, %s1948_s30  }
  0x22   :  { %s1949_s24 = smov [#allocation6]   ;;  %s1919_s28 = scalar_lea.hbm %s2509_s9, 1024 }
  0x23   :  { %s61_s25 = sshll.u32 %s1949_s24, 4  ;;  %p1920_p2 = scmp.ne.s32.totalorder %s2509_s9, %s1919_s28  ;;  %s62_s25 = int_to_ptr.vmem [resolvable:$true] %s61_s25 }
  0x24   :  { %p1923_p3 = scmp.lt.u32.totalorder %s1919_s28, %s2509_s9 }
  0x26   :  { %p1925_p4 = pnand %p1923_p3, %p1920_p2 }
  0x28   :  { %1928 = shalt.err (!%p1925_p4)
}
  0x29   :  { %s1929_s16 = scalar_lea.vmem %s62_s25, 1024  ;;  %p1934_p6 = scmp.lt.s32.totalorder %s62_s25, %s62_s25 }
  0x2a   :  { %p1930_p5 = scmp.ne.s32.totalorder %s62_s25, %s1929_s16  ;;  %p1935_p7 = scmp.lt.s32.totalorder %s1929_s16, %s1929_s16 }
  0x2c   :  { %p1936_p8 = por %p1935_p7, %p1934_p6 }
  0x2e   :  { %p1937_p9 = pnand %p1936_p8, %p1930_p5 }
  0x30   :  { %1940 = shalt.err (!%p1937_p9)
}
  0x31   :  { %67 = dma.hbm_to_vmem [thread:$0]  %s2509_s9, 1024, %s62_s25, [#allocation5], %s1947_s29, %s1947_s29, %s1948_s30  }
  0x32   :  { %1941 = dma.done.wait [#allocation3], 1024  }
  0x33   :  { %1942 = vsyncadd [#allocation3], 4294966272 }
  0x34   :  { %1943 = dma.done.wait [#allocation5], 2048  }
  0x35   :  { %1944 = vsyncadd [#allocation5], 4294965248  ;;  %v1688_v0 = vld [vmem:[%s2501_s1 + $0x104] ss:$8 sps:$4 sm:$0xff]   ;;  %v1690_v1 = vld [vmem:[%s2501_s1 + $0x100] ss:$8 sps:$4 sm:$0xff]  }
  0x36   :  { %748 = vmatprep.subr.bf16.mxu0 %v1688_v0  ;;  %v1691_v2 = vld [vmem:[%s2501_s1 + $0x114] ss:$8 sps:$4 sm:$0xff]   ;;  %v1693_v3 = vld [vmem:[%s2501_s1 + $0x110] ss:$8 sps:$4 sm:$0xff]   ;;  %v1694_v4 = vld [vmem:[%s2501_s1 + $0x124] ss:$8 sps:$4 sm:$0xff]  }
  0x37   :  { %749 = vmatpush1.bf16.msra.mxu0 %v1690_v1  ;;  %v1696_v5 = vld [vmem:[%s2501_s1 + $0x120] ss:$8 sps:$4 sm:$0xff]   ;;  %v1697_v6 = vld [vmem:[%s2501_s1 + $0x134] ss:$8 sps:$4 sm:$0xff]   ;;  %v1699_v7 = vld [vmem:[%s2501_s1 + $0x130] ss:$8 sps:$4 sm:$0xff]  }
  0x38   :  { %750 = vmatprep.subr.bf16.mxu0 %v1691_v2  ;;  %v1700_v8 = vld [vmem:[%s2501_s1 + $0x144] ss:$8 sps:$4 sm:$0xff]   ;;  %v1702_v9 = vld [vmem:[%s2501_s1 + $0x140] ss:$8 sps:$4 sm:$0xff]   ;;  %v1703_v10 = vld [vmem:[%s2501_s1 + $0x154] ss:$8 sps:$4 sm:$0xff]  }
  0x39   :  { %v1705_v11 = vld [vmem:[%s2501_s1 + $0x150] ss:$8 sps:$4 sm:$0xff]   ;;  %v1706_v12 = vld [vmem:[%s2501_s1 + $0x164] ss:$8 sps:$4 sm:$0xff]   ;;  %v1708_v16 = vld [vmem:[%s2501_s1 + $0x160] ss:$8 sps:$4 sm:$0xff]  }
  0x3a   :  { %v83_v13 = vld [vmem:[%s2500_s0 + $0x18] sm:$0xff]  ;;  %v90_v14 = vld [vmem:[%s2500_s0 + $0x50] sm:$0xff]  ;;  %v1742_v18 = vld [vmem:[%s2501_s1 + $0x4] ss:$8 sps:$4 sm:$0xff]   ;;  %vm701_vm0 = vcmask 130048   ;;  %vm1952_vm1 = vmmov 0  }
  0x3b   :  { %751 = vmatpush1.bf16.msra.mxu0 %v1693_v3  ;;  %v97_v15 = vpack.c.bf16 %v90_v14, %v83_v13  ;;  %v1709_v17 = vld [vmem:[%s2501_s1 + $0x174] ss:$8 sps:$4 sm:$0xff]   ;;  %v1711_v19 = vld [vmem:[%s2501_s1 + $0x170] ss:$8 sps:$4 sm:$0xff]   ;;  %v1712_v20 = vld [vmem:[%s2501_s1 + $0x184] ss:$8 sps:$4 sm:$0xff]   ;;  %705 = vmatprep.subr.bf16.mxu1 %v1742_v18 }
  0x3c   :  { %752 = vmatprep.subr.bf16.mxu0 %v1694_v4  ;;  %v1747_v21 = vld [vmem:[%s2501_s1] ss:$8 sps:$4 sm:$0xff]   ;;  %v1748_v22 = vld [vmem:[%s2501_s1 + $0x14] ss:$8 sps:$4 sm:$0xff]   ;;  %v1753_v24 = vld [vmem:[%s2501_s1 + $0x10] ss:$8 sps:$4 sm:$0xff]  }
  0x3d   :  { %780 = vmatprep.mubr.bf16.mxu0 %v97_v15  ;;  %706 = vmatpush1.bf16.msra.mxu1 %v1747_v21  ;;  %v1714_v23 = vld [vmem:[%s2501_s1 + $0x180] ss:$8 sps:$4 sm:$0xff]   ;;  %v1754_v25 = vld [vmem:[%s2501_s1 + $0x24] ss:$8 sps:$4 sm:$0xff]   ;;  %v1715_v26 = vld [vmem:[%s2501_s1 + $0x194] ss:$8 sps:$4 sm:$0xff]  }
  0x3e   :  { %707 = vmatprep.subr.bf16.mxu1 %v1748_v22  ;;  %v1759_v27 = vld [vmem:[%s2501_s1 + $0x20] ss:$8 sps:$4 sm:$0xff]   ;;  %v1760_v28 = vld [vmem:[%s2501_s1 + $0x34] ss:$8 sps:$4 sm:$0xff]   ;;  %v1717_v29 = vld [vmem:[%s2501_s1 + $0x190] ss:$8 sps:$4 sm:$0xff]  }
  0x3f   :  { %753 = vmatpush1.bf16.msra.mxu0 %v1696_v5  ;;  %v1718_v30 = vld [vmem:[%s2501_s1 + $0x1a4] ss:$8 sps:$4 sm:$0xff]   ;;  %v1765_v31 = vld [vmem:[%s2501_s1 + $0x30] ss:$8 sps:$4 sm:$0xff]   ;;  %v1720_v33 = vld [vmem:[%s2501_s1 + $0x1a0] ss:$8 sps:$4 sm:$0xff]  }
  0x40   :  { %754 = vmatprep.subr.bf16.mxu0 %v1697_v6  ;;  %v1766_v32 = vld [vmem:[%s2501_s1 + $0x44] ss:$8 sps:$4 sm:$0xff]   ;;  %v1721_v34 = vld [vmem:[%s2501_s1 + $0x1b4] ss:$8 sps:$4 sm:$0xff]   ;;  %v1771_v35 = vld [vmem:[%s2501_s1 + $0x40] ss:$8 sps:$4 sm:$0xff]  }
  0x41   :  { %708 = vmatpush1.bf16.msra.mxu1 %v1753_v24  ;;  %v1772_v36 = vld [vmem:[%s2501_s1 + $0x54] ss:$8 sps:$4 sm:$0xff]   ;;  %v1723_v37 = vld [vmem:[%s2501_s1 + $0x1b0] ss:$8 sps:$4 sm:$0xff]   ;;  %v1724_v38 = vld [vmem:[%s2501_s1 + $0x1c4] ss:$8 sps:$4 sm:$0xff]  }
  0x42   :  { %709 = vmatprep.subr.bf16.mxu1 %v1754_v25  ;;  %v1777_v39 = vld [vmem:[%s2501_s1 + $0x50] ss:$8 sps:$4 sm:$0xff]   ;;  %v1778_v40 = vld [vmem:[%s2501_s1 + $0x64] ss:$8 sps:$4 sm:$0xff]   ;;  %v1726_v41 = vld [vmem:[%s2501_s1 + $0x1c0] ss:$8 sps:$4 sm:$0xff]  }
  0x43   :  { %755 = vmatpush1.bf16.msra.mxu0 %v1699_v7  ;;  %v1727_v42 = vld [vmem:[%s2501_s1 + $0x1d4] ss:$8 sps:$4 sm:$0xff]   ;;  %v1783_v43 = vld [vmem:[%s2501_s1 + $0x60] ss:$8 sps:$4 sm:$0xff]   ;;  %v1729_v45 = vld [vmem:[%s2501_s1 + $0x1d0] ss:$8 sps:$4 sm:$0xff]  }
  0x44   :  { %756 = vmatprep.subr.bf16.mxu0 %v1700_v8  ;;  %v1784_v44 = vld [vmem:[%s2501_s1 + $0x74] ss:$8 sps:$4 sm:$0xff]   ;;  %v1730_v46 = vld [vmem:[%s2501_s1 + $0x1e4] ss:$8 sps:$4 sm:$0xff]   ;;  %v1789_v47 = vld [vmem:[%s2501_s1 + $0x70] ss:$8 sps:$4 sm:$0xff]  }
  0x45   :  { %710 = vmatpush1.bf16.msra.mxu1 %v1759_v27  ;;  %v1790_v48 = vld [vmem:[%s2501_s1 + $0x84] ss:$8 sps:$4 sm:$0xff]   ;;  %v1732_v49 = vld [vmem:[%s2501_s1 + $0x1e0] ss:$8 sps:$4 sm:$0xff]   ;;  %v1733_v50 = vld [vmem:[%s2501_s1 + $0x1f4] ss:$8 sps:$4 sm:$0xff]  }
  0x46   :  { %711 = vmatprep.subr.bf16.mxu1 %v1760_v28  ;;  %v1795_v51 = vld [vmem:[%s2501_s1 + $0x80] ss:$8 sps:$4 sm:$0xff]   ;;  %v1796_v52 = vld [vmem:[%s2501_s1 + $0x94] ss:$8 sps:$4 sm:$0xff]   ;;  %v1735_v53 = vld [vmem:[%s2501_s1 + $0x1f0] ss:$8 sps:$4 sm:$0xff]  }
  0x47   :  { %757 = vmatpush1.bf16.msra.mxu0 %v1702_v9  ;;  %v82_v54 = vld [vmem:[%s2500_s0 + $0x10] sm:$0xff]  ;;  %v89_v55 = vld [vmem:[%s2500_s0 + $0x48] sm:$0xff]  ;;  %v92_v62 = vld [vmem:[%s2500_s0 + $0x60] sm:$0xff] }
  0x48   :  { %758 = vmatprep.subr.bf16.mxu0 %v1703_v10  ;;  %v1738_v56 = vld [vmem:[%s2501_s1 + $0x204] ss:$8 sps:$4 sm:$0xff]   ;;  %v1801_v57 = vld [vmem:[%s2501_s1 + $0x90] ss:$8 sps:$4 sm:$0xff]   ;;  %v1736_v58 = vld [vmem:[%s2501_s1 + $0x200] ss:$8 sps:$4 sm:$0xff]   ;;  %v96_v59 = vpack.c.bf16 %v89_v55, %v82_v54 }
  0x49   :  { %712 = vmatpush1.bf16.msra.mxu1 %v1765_v31  ;;  %v1802_v60 = vld [vmem:[%s2501_s1 + $0xa4] ss:$8 sps:$4 sm:$0xff]   ;;  %v1741_v63 = vld [vmem:[%s2501_s1 + $0x214] ss:$8 sps:$4 sm:$0xff]   ;;  %v1807_v1 = vld [vmem:[%s2501_s1 + $0xa0] ss:$8 sps:$4 sm:$0xff]  }
  0x4a   :  { %713 = vmatprep.subr.bf16.mxu1 %v1766_v32  ;;  %v85_v61 = vld [vmem:[%s2500_s0 + $0x28] sm:$0xff]  ;;  %v1808_v2 = vld [vmem:[%s2501_s1 + $0xb4] ss:$8 sps:$4 sm:$0xff]   ;;  %v1739_v3 = vld [vmem:[%s2501_s1 + $0x210] ss:$8 sps:$4 sm:$0xff]  }
  0x4b   :  { %759 = vmatpush1.bf16.msra.mxu0 %v1705_v11  ;;  %v99_v0 = vpack.c.bf16 %v92_v62, %v85_v61  ;;  %v1746_v4 = vld [vmem:[%s2501_s1 + $0x224] ss:$8 sps:$4 sm:$0xff]   ;;  %v1813_v7 = vld [vmem:[%s2501_s1 + $0xb0] ss:$8 sps:$4 sm:$0xff]   ;;  %v1744_v10 = vld [vmem:[%s2501_s1 + $0x220] ss:$8 sps:$4 sm:$0xff]  }
  0x4c   :  { %760 = vmatprep.subr.bf16.mxu0 %v1706_v12  ;;  %v81_v5 = vld [vmem:[%s2500_s0 + $0x8] sm:$0xff]  ;;  %v88_v6 = vld [vmem:[%s2500_s0 + $0x40] sm:$0xff]  ;;  %v1752_v11 = vld [vmem:[%s2501_s1 + $0x234] ss:$8 sps:$4 sm:$0xff]  }
  0x4d   :  { %714 = vmatpush1.bf16.msra.mxu1 %v1771_v35  ;;  %v95_v8 = vpack.c.bf16 %v88_v6, %v81_v5  ;;  %v1814_v9 = vld [vmem:[%s2501_s1 + $0xc4] ss:$8 sps:$4 sm:$0xff]   ;;  %v1819_v12 = vld [vmem:[%s2501_s1 + $0xc0] ss:$8 sps:$4 sm:$0xff]   ;;  %v1820_v13 = vld [vmem:[%s2501_s1 + $0xd4] ss:$8 sps:$4 sm:$0xff]  }
  0x4e   :  { %715 = vmatprep.subr.bf16.mxu1 %v1772_v36  ;;  %v1750_v14 = vld [vmem:[%s2501_s1 + $0x230] ss:$8 sps:$4 sm:$0xff]   ;;  %v1758_v15 = vld [vmem:[%s2501_s1 + $0x244] ss:$8 sps:$4 sm:$0xff]   ;;  %v1764_v18 = vld [vmem:[%s2501_s1 + $0x254] ss:$8 sps:$4 sm:$0xff]  }
  0x4f   :  { %761 = vmatpush1.bf16.msra.mxu0 %v1708_v16  ;;  %737 = vmatprep.mubr.bf16.mxu1 %v95_v8  ;;  %v1756_v16 = vld [vmem:[%s2501_s1 + $0x240] ss:$8 sps:$4 sm:$0xff]   ;;  %v1832_v21 = vld [vmem:[%s2501_s1 + $0xf4] ss:$8 sps:$4 sm:$0xff]   ;;  %v1762_v22 = vld [vmem:[%s2501_s1 + $0x250] ss:$8 sps:$4 sm:$0xff]  }
  0x50   :  { %762 = vmatprep.subr.bf16.mxu0 %v1709_v17  ;;  %v1825_v17 = vld [vmem:[%s2501_s1 + $0xd0] ss:$8 sps:$4 sm:$0xff]   ;;  %v80_v25 = vld [vmem:[%s2500_s0] sm:$0xff]  ;;  %v1776_v28 = vld [vmem:[%s2501_s1 + $0x274] ss:$8 sps:$4 sm:$0xff]  }
  0x51   :  { %716 = vmatpush1.bf16.msra.mxu1 %v1777_v39  ;;  %v1834_v24 = vld [vmem:[%s2501_s1 + $0xf0] ss:$8 sps:$4 sm:$0xff]   ;;  %v1768_v27 = vld [vmem:[%s2501_s1 + $0x260] ss:$8 sps:$4 sm:$0xff]   ;;  %v1782_v31 = vld [vmem:[%s2501_s1 + $0x284] ss:$8 sps:$4 sm:$0xff]  }
  0x52   :  { %717 = vmatprep.subr.bf16.mxu1 %v1778_v40  ;;  %v1780_v32 = vld [vmem:[%s2501_s1 + $0x280] ss:$8 sps:$4 sm:$0xff]   ;;  %v1794_v35 = vld [vmem:[%s2501_s1 + $0x2a4] ss:$8 sps:$4 sm:$0xff]   ;;  %v86_v54 = vld [vmem:[%s2500_s0 + $0x30] sm:$0xff] }
  0x53   :  { %763 = vmatpush1.bf16.msra.mxu0 %v1711_v19  ;;  %v1826_v19 = vld [vmem:[%s2501_s1 + $0xe4] ss:$8 sps:$4 sm:$0xff]   ;;  %v1792_v36 = vld [vmem:[%s2501_s1 + $0x2a0] ss:$8 sps:$4 sm:$0xff]   ;;  %v1840_v61 = vld [vmem:[%s2503_s3 + $0x10] sm:$0xff]  }
  0x54   :  { %764 = vmatprep.subr.bf16.mxu0 %v1712_v20  ;;  %v1831_v20 = vld [vmem:[%s2501_s1 + $0xe0] ss:$8 sps:$4 sm:$0xff]   ;;  %v1806_v39 = vld [vmem:[%s2501_s1 + $0x2c4] ss:$8 sps:$4 sm:$0xff]   ;;  %v1841_v62 = vld [vmem:[%s2503_s3 + $0x58] sm:$0xff]  }
  0x55   :  { %718 = vmatpush1.bf16.msra.mxu1 %v1783_v43  ;;  %v1804_v40 = vld [vmem:[%s2501_s1 + $0x2c0] ss:$8 sps:$4 sm:$0xff]   ;;  %v1818_v43 = vld [vmem:[%s2501_s1 + $0x2e4] ss:$8 sps:$4 sm:$0xff]   ;;  %v1848_v5 = vld [vmem:[%s2503_s3 + $0x30] sm:$0xff]  }
  0x56   :  { %719 = vmatprep.subr.bf16.mxu1 %v1784_v44  ;;  %v1816_v44 = vld [vmem:[%s2501_s1 + $0x2e0] ss:$8 sps:$4 sm:$0xff]   ;;  %v1849_v6 = vld [vmem:[%s2503_s3 + $0x78] sm:$0xff]   ;;  %v1851_v8 = vld [vmem:[#allocation2] sm:$0xff]  }
  0x57   :  { %765 = vmatpush1.bf16.msra.mxu0 %v1714_v23  ;;  %v1770_v23 = vld [vmem:[%s2501_s1 + $0x264] ss:$8 sps:$4 sm:$0xff]  }
  0x58   :  { %766 = vmatprep.subr.bf16.mxu0 %v1715_v26  ;;  %v87_v26 = vld [vmem:[%s2500_s0 + $0x38] sm:$0xff]  ;;  %v93_v55 = vld [vmem:[%s2500_s0 + $0x68] sm:$0xff] }
  0x59   :  { %720 = vmatpush1.bf16.msra.mxu1 %v1789_v47  ;;  %v84_v47 = vld [vmem:[%s2500_s0 + $0x20] sm:$0xff] }
  0x5a   :  { %721 = vmatprep.subr.bf16.mxu1 %v1790_v48  ;;  %v91_v48 = vld [vmem:[%s2500_s0 + $0x58] sm:$0xff] }
  0x5b   :  { %767 = vmatpush1.bf16.msra.mxu0 %v1717_v29  ;;  %v94_v29 = vpack.c.bf16 %v87_v26, %v80_v25 }
  0x5c   :  { %768 = vmatprep.subr.bf16.mxu0 %v1718_v30  ;;  %v1774_v30 = vld [vmem:[%s2501_s1 + $0x270] ss:$8 sps:$4 sm:$0xff]  }
  0x5d   :  { %722 = vmatpush1.bf16.msra.mxu1 %v1795_v51  ;;  %v1828_v51 = vld [vmem:[%s2501_s1 + $0x300] ss:$8 sps:$4 sm:$0xff]  }
  0x5e   :  { %723 = vmatprep.subr.bf16.mxu1 %v1796_v52  ;;  %v1835_v52 = vld [vmem:[%s2503_s3 + $0x40] sm:$0xff]  }
  0x5f   :  { %769 = vmatpush1.bf16.msra.mxu0 %v1720_v33  ;;  %v1788_v33 = vld [vmem:[%s2501_s1 + $0x294] ss:$8 sps:$4 sm:$0xff]  }
  0x60   :  { %770 = vmatprep.subr.bf16.mxu0 %v1721_v34  ;;  %v1786_v34 = vld [vmem:[%s2501_s1 + $0x290] ss:$8 sps:$4 sm:$0xff]  }
  0x61   :  { %724 = vmatpush1.bf16.msra.mxu1 %v1801_v57  ;;  %v1836_v57 = vld [vmem:[%s2503_s3] sm:$0xff]  }
  0x62   :  { %725 = vmatprep.subr.bf16.mxu1 %v1802_v60  ;;  %v1839_v60 = vld [vmem:[%s2503_s3 + $0x50] sm:$0xff]  }
  0x63   :  { %771 = vmatpush1.bf16.msra.mxu0 %v1723_v37  ;;  %v1800_v37 = vld [vmem:[%s2501_s1 + $0x2b4] ss:$8 sps:$4 sm:$0xff]  }
  0x64   :  { %772 = vmatprep.subr.bf16.mxu0 %v1724_v38  ;;  %v1798_v38 = vld [vmem:[%s2501_s1 + $0x2b0] ss:$8 sps:$4 sm:$0xff]  }
  0x65   :  { %726 = vmatpush1.bf16.msra.mxu1 %v1807_v1  ;;  %v1844_v1 = vld [vmem:[%s2503_s3 + $0x20] sm:$0xff]  }
  0x66   :  { %727 = vmatprep.subr.bf16.mxu1 %v1808_v2  ;;  %v1845_v2 = vld [vmem:[%s2503_s3 + $0x68] sm:$0xff]  }
  0x67   :  { %773 = vmatpush1.bf16.msra.mxu0 %v1726_v41  ;;  %v1812_v41 = vld [vmem:[%s2501_s1 + $0x2d4] ss:$8 sps:$4 sm:$0xff]  }
  0x68   :  { %774 = vmatprep.subr.bf16.mxu0 %v1727_v42  ;;  %v1810_v42 = vld [vmem:[%s2501_s1 + $0x2d0] ss:$8 sps:$4 sm:$0xff]  }
  0x69   :  { %728 = vmatpush1.bf16.msra.mxu1 %v1813_v7  ;;  %v1850_v7 = vld [vmem:[%s2503_s3 + $0x38] sm:$0xff]  }
  0x6a   :  { %729 = vmatprep.subr.bf16.mxu1 %v1814_v9  ;;  %v1951_v9 = vmov 0.0  }
  0x6b   :  { %775 = vmatpush1.bf16.msra.mxu0 %v1729_v45  ;;  %v1824_v45 = vld [vmem:[%s2501_s1 + $0x2f4] ss:$8 sps:$4 sm:$0xff]  }
  0x6c   :  { %776 = vmatprep.subr.bf16.mxu0 %v1730_v46  ;;  %v1822_v46 = vld [vmem:[%s2501_s1 + $0x2f0] ss:$8 sps:$4 sm:$0xff]  }
  0x6d   :  { %730 = vmatpush1.bf16.msra.mxu1 %v1819_v12  ;;  %v1854_v12 = vld [vmem:[#allocation2 + $0x18] sm:$0xff]  }
  0x6e   :  { %731 = vmatprep.subr.bf16.mxu1 %v1820_v13  ;;  %v1855_v13 = vld [vmem:[#allocation2 + $0x20] sm:$0xff]  }
  0x6f   :  { %777 = vmatpush1.bf16.msra.mxu0 %v1732_v49  ;;  %v1830_v49 = vld [vmem:[%s2501_s1 + $0x304] ss:$8 sps:$4 sm:$0xff]  }
  0x70   :  { %778 = vmatprep.subr.bf16.mxu0 %v1733_v50  ;;  %v98_v50 = vpack.c.bf16 %v91_v48, %v84_v47  ;;  %v1511_v47 = vld [vmem:[%s2504_s4] ss:$0 sm:$0xff] }
  0x71   :  { %732 = vmatpush1.bf16.msra.mxu1 %v1825_v17 }
  0x72   :  { %733 = vmatprep.subr.bf16.mxu1 %v1826_v19 }
  0x73   :  { %779 = vmatpush1.bf16.msra.mxu0 %v1735_v53  ;;  %v1950_v53 = vmov 0  }
  0x74   :  { %791 = vmatprep.subr.bf16.mxu0 %v1738_v56  ;;  %v100_v56 = vpack.c.bf16 %v93_v55, %v86_v54 }
  0x75   :  { %734 = vmatpush1.bf16.msra.mxu1 %v1831_v20 }
  0x76   :  { %781 = vmatmul.mubr.bf16.vlgmr.msra.gmra.mrb[0].mxu0 %v96_v59  ;;  %735 = vmatprep.subr.bf16.mxu1 %v1832_v21  ;;  %v1838_v59 = vld [vmem:[%s2503_s3 + $0x8] sm:$0xff]   ;;  %v199_v21 = vld [vmem:[%s2502_s2] sm:$0x3] }
  0x77   :  { %792 = vmatpush1.bf16.msra.mxu0 %v1736_v58  ;;  %823 = vmatprep.mubr.bf16.mxu0 %v99_v0  ;;  %v1837_v58 = vld [vmem:[%s2503_s3 + $0x48] sm:$0xff]   ;;  %v1843_v0 = vld [vmem:[%s2503_s3 + $0x60] sm:$0xff]  }
  0x78   :  { %793 = vmatprep.subr.bf16.mxu0 %v1741_v63  ;;  %v1842_v63 = vld [vmem:[%s2503_s3 + $0x18] sm:$0xff]  }
  0x79   :  { %736 = vmatpush1.bf16.msra.mxu1 %v1834_v24 }
  0x7a   :  { %1604 = vmatprep.subr.bf16.mxu1 %v1951_v9 }
  0x7b   :  { %794 = vmatpush1.bf16.msra.mxu0 %v1739_v3  ;;  %v1846_v3 = vld [vmem:[%s2503_s3 + $0x28] sm:$0xff]  }
  0x7c   :  { %795 = vmatprep.subr.bf16.mxu0 %v1746_v4  ;;  %738 = vmatmul.mubr.bf16.vlgmr.msra.gmra.mrb[0].mxu1 %v94_v29  ;;  %v1847_v4 = vld [vmem:[%s2503_s3 + $0x70] sm:$0xff]  }
  0x7d   :  { %1605 = vmatpush3.bf16.msra.mxu1 %v1851_v8  ;;  %1620 = vmatprep.mubr.msk.bf16.mxu1 %vm1952_vm1, %v1951_v9 }
  0x7e   :  { %1606 = vmatprep.subr.bf16.mxu1 %v1951_v9 }
  0x7f   :  { %796 = vmatpush1.bf16.msra.mxu0 %v1744_v10  ;;  %v1852_v10 = vld [vmem:[#allocation2 + $0x8] sm:$0xff]  }
  0x80   :  { %797 = vmatprep.subr.bf16.mxu0 %v1752_v11  ;;  %v1853_v11 = vld [vmem:[#allocation2 + $0x10] sm:$0xff]  }
  0x81   :  { %1607 = vmatpush3.bf16.msra.mxu1 %v1852_v10 }
  0x82   :  { %1608 = vmatprep.subr.bf16.mxu1 %v1951_v9 }
  0x83   :  { %798 = vmatpush1.bf16.msra.mxu0 %v1750_v14 }
  0x84   :  { %799 = vmatprep.subr.bf16.mxu0 %v1758_v15 }
  0x85   :  { %1609 = vmatpush3.bf16.msra.mxu1 %v1853_v11 }
  0x86   :  { %1610 = vmatprep.subr.bf16.mxu1 %v1951_v9 }
  0x87   :  { %800 = vmatpush1.bf16.msra.mxu0 %v1756_v16 }
  0x88   :  { %801 = vmatprep.subr.bf16.mxu0 %v1764_v18  ;;  %v201_v18 = vlaneseq }
  0x89   :  { %1611 = vmatpush3.bf16.msra.mxu1 %v1854_v12  ;;  %v1867_v12 = vld [vmem:[#allocation6] sm:$0xff]  }
  0x8a   :  { %1612 = vmatprep.subr.bf16.mxu1 %v1951_v9  ;;  %v202_v19 = vshrl.u32 %v201_v18, 7  ;;  %v1872_v18 = vld [vmem:[#allocation6 + $0x28] sm:$0xff]  }
  0x8b   :  { %802 = vmatpush1.bf16.msra.mxu0 %v1762_v22 }
  0x8c   :  { %803 = vmatprep.subr.bf16.mxu0 %v1770_v23  ;;  %v203_v20 = vsub.s32 0, %v202_v19  ;;  %v207_v22 = vsub.s32 1, %v202_v19  ;;  %v1873_v19 = vld [vmem:[#allocation6 + $0x30] sm:$0xff]  }
  0x8d   :  { %1613 = vmatpush3.bf16.msra.mxu1 %v1855_v13 }
  0x8e   :  { %1614 = vmatprep.subr.bf16.mxu1 %v1951_v9  ;;  %v204_v23 = vrot.slane %v199_v21, %v203_v20  ;;  %v208_v24 = vrot.slane %v199_v21, %v207_v22  ;;  %v1874_v20 = vld [vmem:[#allocation6 + $0x38] sm:$0xff]   ;;  %v1537_v21 = vld [vmem:[%s2508_s8] ss:$0 sm:$0xff] }
  0x8f   :  { %804 = vmatpush1.bf16.msra.mxu0 %v1768_v27 }
  0x90   :  { %805 = vmatprep.subr.bf16.mxu0 %v1776_v28 }
  0x93   :  { %806 = vmatpush1.bf16.msra.mxu0 %v1774_v30 }
  0x94   :  { %807 = vmatprep.subr.bf16.mxu0 %v1782_v31 }
  0x97   :  { %808 = vmatpush1.bf16.msra.mxu0 %v1780_v32 }
  0x98   :  { %809 = vmatprep.subr.bf16.mxu0 %v1788_v33 }
  0x9b   :  { %810 = vmatpush1.bf16.msra.mxu0 %v1786_v34 }
  0x9c   :  { %811 = vmatprep.subr.bf16.mxu0 %v1794_v35 }
  0x9f   :  { %812 = vmatpush1.bf16.msra.mxu0 %v1792_v36 }
  0xa0   :  { %813 = vmatprep.subr.bf16.mxu0 %v1800_v37 }
  0xa3   :  { %814 = vmatpush1.bf16.msra.mxu0 %v1798_v38 }
  0xa4   :  { %815 = vmatprep.subr.bf16.mxu0 %v1806_v39 }
  0xa7   :  { %816 = vmatpush1.bf16.msra.mxu0 %v1804_v40 }
  0xa8   :  { %817 = vmatprep.subr.bf16.mxu0 %v1812_v41 }
  0xab   :  { %818 = vmatpush1.bf16.msra.mxu0 %v1810_v42 }
  0xac   :  { %819 = vmatprep.subr.bf16.mxu0 %v1818_v43  ;;  %v1856_v43 = vld [vmem:[#allocation2 + $0x28] sm:$0xff]  }
  0xad   :  { %1615 = vmatpush3.bf16.msra.mxu1 %v1856_v43 }
  0xae   :  { %1616 = vmatprep.subr.bf16.mxu1 %v1951_v9 }
  0xaf   :  { %820 = vmatpush1.bf16.msra.mxu0 %v1816_v44  ;;  %v1857_v44 = vld [vmem:[#allocation2 + $0x30] sm:$0xff]  }
  0xb0   :  { %821 = vmatprep.subr.bf16.mxu0 %v1824_v45  ;;  %v1858_v45 = vld [vmem:[#allocation2 + $0x38] sm:$0xff]  }
  0xb1   :  { %1617 = vmatpush3.bf16.msra.mxu1 %v1857_v44 }
  0xb2   :  { %1618 = vmatprep.subr.bf16.mxu1 %v1951_v9 }
  0xb3   :  { %822 = vmatpush1.bf16.msra.mxu0 %v1822_v46 }
  0xb4   :  { %834 = vmatprep.subr.bf16.mxu0 %v1830_v49 }
  0xb5   :  { %1619 = vmatpush3.bf16.msra.mxu1 %v1858_v45 }
  0xb6   :  { %824 = vmatmul.mubr.bf16.vlgmr.msra.gmra.mrb[0].mxu0 %v98_v50  ;;  %1624 = vmatprep.subr.bf16.mxu1 %v1951_v9 }
  0xb7   :  { %835 = vmatpush1.bf16.msra.mxu0 %v1828_v51  ;;  %866 = vmatprep.mubr.bf16.mxu0 %v1950_v53 }
  0xb8   :  { %1555 = vmatprep.subr.bf16.mxu0 %v1835_v52 }
  0xc2   :  { %1510 = vmatmul.mubr.msk.bf16.vlgmr.msra.gmra.mrb[0].mxu0 %vm701_vm0, %v100_v56 }
  0xc3   :  { %1556 = vmatpush3.bf16.msra.mxu0 %v1836_v57  ;;  %v1859_v57 = vld [vmem:[#allocation4] sm:$0xff]  }
  0xc4   :  { %1557 = vmatprep.subr.bf16.mxu0 %v1837_v58 }
  0xc7   :  { %1558 = vmatpush3.bf16.msra.mxu0 %v1838_v59  ;;  %v1860_v59 = vld [vmem:[#allocation4 + $0x8] sm:$0xff]  }
  0xc8   :  { %1559 = vmatprep.subr.bf16.mxu0 %v1839_v60  ;;  %v1861_v60 = vld [vmem:[#allocation4 + $0x10] sm:$0xff]  }
  0xcb   :  { %1560 = vmatpush3.bf16.msra.mxu0 %v1840_v61  ;;  %v1862_v61 = vld [vmem:[#allocation4 + $0x18] sm:$0xff]  }
  0xcc   :  { %1561 = vmatprep.subr.bf16.mxu0 %v1841_v62  ;;  %v1863_v62 = vld [vmem:[#allocation4 + $0x20] sm:$0xff]  }
  0xcf   :  { %1562 = vmatpush3.bf16.msra.mxu0 %v1842_v63  ;;  %v1864_v63 = vld [vmem:[#allocation4 + $0x28] sm:$0xff]  }
  0xd0   :  { %1563 = vmatprep.subr.bf16.mxu0 %v1843_v0  ;;  %v1865_v0 = vld [vmem:[#allocation4 + $0x30] sm:$0xff]  }
  0xd3   :  { %1564 = vmatpush3.bf16.msra.mxu0 %v1844_v1  ;;  %v1866_v1 = vld [vmem:[#allocation4 + $0x38] sm:$0xff]  }
  0xd4   :  { %1565 = vmatprep.subr.bf16.mxu0 %v1845_v2  ;;  %v1528_v2 = vld [vmem:[%s2506_s6] ss:$0 sm:$0xff] }
  0xd7   :  { %1566 = vmatpush3.bf16.msra.mxu0 %v1846_v3 }
  0xd8   :  { %1567 = vmatprep.subr.bf16.mxu0 %v1847_v4 }
  0xdb   :  { %1568 = vmatpush3.bf16.msra.mxu0 %v1848_v5 }
  0xdc   :  { %1569 = vmatprep.subr.bf16.mxu0 %v1849_v6 }
  0xdf   :  { %1570 = vmatpush3.bf16.msra.mxu0 %v1850_v7 }
 0x14f   :  { %v739_v14 = vpop.f32.mrb[0].mxu1 }
 0x150   :  { %v741_v15 = vpop.f32.mrb[1].mxu1  ;;  %v740_v25 = vadd.f32 %v739_v14, %v204_v23  ;;  %v1868_v14 = vld [vmem:[#allocation6 + $0x8] sm:$0xff]  }
 0x151   :  { %v743_v16 = vpop.f32.mrb[2].mxu1  ;;  %v742_v26 = vadd.f32 %v741_v15, %v208_v24  ;;  %v1869_v15 = vld [vmem:[#allocation6 + $0x10] sm:$0xff]  }
 0x152   :  { %v745_v17 = vpop.f32.mrb[3].mxu1  ;;  %v744_v28 = vadd.f32 %v743_v16, %v204_v23  ;;  %v1870_v16 = vld [vmem:[#allocation6 + $0x18] sm:$0xff]  }
 0x153   :  { %v746_v31 = vadd.f32 %v745_v17, %v208_v24  ;;  %v1871_v17 = vld [vmem:[#allocation6 + $0x20] sm:$0xff]  }
 0x195   :  { %v868_v27 = vpop.f32.mrb[0].mxu0 }
 0x196   :  { %v1665_v29 = vadd.f32 %v868_v27, %v740_v25  ;;  %v870_v30 = vpop.f32.mrb[1].mxu0 }
 0x197   :  { %v1667_v32 = vadd.f32 %v870_v30, %v742_v26  ;;  %v872_v33 = vpop.f32.mrb[2].mxu0 }
 0x198   :  { %v1669_v34 = vadd.f32 %v872_v33, %v744_v28  ;;  %v874_v35 = vpop.f32.mrb[3].mxu0  ;;  %v877_v37 = vmax.f32 %v1665_v29, 0.0 }
 0x199   :  { %v1671_v36 = vadd.f32 %v874_v35, %v746_v31  ;;  %v878_v39 = vmax.f32 %v1667_v32, 0.0 }
 0x19a   :  { %v879_v38 = vmax.f32 %v1669_v34, 0.0 }
 0x19b   :  { %v880_v40 = vmax.f32 %v1671_v36, 0.0 }
 0x19c   :  { %v881_v41 = vpack.c.bf16 %v879_v38, %v877_v37 }
 0x19d   :  { %v882_v42 = vpack.c.bf16 %v880_v40, %v878_v39 }
 0x19f   :  { %1050 = vmatprep.mubr.bf16.mxu0 %v882_v42 }
 0x1a0   :  { %1051 = vmatmul.mubr.bf16.vlgmr.msra.gmra.mrb[4].mxu0 %v881_v41 }
 0x273   :  { %v1571_v46 = vpop.f32.mrb[4].mxu0 }
 0x274   :  { %v1572_v48 = vpop.f32.mrb[5].mxu0 }
 0x275   :  { %v1573_v49 = vadd.f32 %v1572_v48, %v1571_v46  ;;  %v1574_v50 = vpop.f32.mrb[6].mxu0 }
 0x276   :  { %v1575_v51 = vpop.f32.mrb[7].mxu0 }
 0x277   :  { %v1053_v52 = vadd.f32 %v1573_v49, %v1511_v47  ;;  %v1576_v53 = vadd.f32 %v1575_v51, %v1574_v50 }
 0x279   :  { %v1056_v54 = vadd.f32 %v1576_v53, %v1511_v47  ;;  %v1059_v55 = vmax.f32 %v1053_v52, 0.0 }
 0x27b   :  { %v1060_v56 = vmax.f32 %v1056_v54, 0.0 }
 0x27d   :  { %v1061_v58 = vpack.c.bf16 %v1060_v56, %v1059_v55 }
 0x27f   :  { %1621 = vmatmul.mubr.bf16.vlgmr.msra.gmra.mrb[4].mxu1 %v1061_v58 }
 0x280   :  { %1625 = vmatpush3.bf16.msra.mxu1 %v1859_v57  ;;  %1640 = vmatprep.mubr.msk.bf16.mxu1 %vm1952_vm1, %v1951_v9 }
 0x281   :  { %1626 = vmatprep.subr.bf16.mxu1 %v1951_v9 }
 0x284   :  { %1627 = vmatpush3.bf16.msra.mxu1 %v1860_v59 }
 0x285   :  { %1628 = vmatprep.subr.bf16.mxu1 %v1951_v9 }
 0x288   :  { %1629 = vmatpush3.bf16.msra.mxu1 %v1861_v60 }
 0x289   :  { %1630 = vmatprep.subr.bf16.mxu1 %v1951_v9 }
 0x28c   :  { %1631 = vmatpush3.bf16.msra.mxu1 %v1862_v61 }
 0x28d   :  { %1632 = vmatprep.subr.bf16.mxu1 %v1951_v9 }
 0x290   :  { %1633 = vmatpush3.bf16.msra.mxu1 %v1863_v62 }
 0x291   :  { %1634 = vmatprep.subr.bf16.mxu1 %v1951_v9 }
 0x294   :  { %1635 = vmatpush3.bf16.msra.mxu1 %v1864_v63 }
 0x295   :  { %1636 = vmatprep.subr.bf16.mxu1 %v1951_v9 }
 0x298   :  { %1637 = vmatpush3.bf16.msra.mxu1 %v1865_v0 }
 0x299   :  { %1638 = vmatprep.subr.bf16.mxu1 %v1951_v9 }
 0x29c   :  { %1639 = vmatpush3.bf16.msra.mxu1 %v1866_v1 }
 0x29d   :  { %1644 = vmatprep.subr.bf16.mxu1 %v1951_v9 }
 0x352   :  { %v1167_v3 = vpop.f32.mrb[4].mxu1 }
 0x353   :  { %v1168_v4 = vadd.f32 %v1528_v2, %v1167_v3  ;;  %v1622_v5 = vpop.f32.mrb[5].mxu1 }
 0x354   :  { %v1170_v6 = vpop.f32.mrb[6].mxu1 }
 0x355   :  { %v1171_v7 = vadd.f32 %v1528_v2, %v1170_v6  ;;  %v1623_v8 = vpop.f32.mrb[7].mxu1  ;;  %v1174_v10 = vmax.f32 %v1168_v4, 0.0 }
 0x357   :  { %v1175_v11 = vmax.f32 %v1171_v7, 0.0 }
 0x359   :  { %v1176_v13 = vpack.c.bf16 %v1175_v11, %v1174_v10 }
 0x35b   :  { %1641 = vmatmul.mubr.bf16.vlgmr.msra.gmra.mrb[8].mxu1 %v1176_v13 }
 0x35c   :  { %1645 = vmatpush3.bf16.msra.mxu1 %v1867_v12  ;;  %1660 = vmatprep.mubr.msk.bf16.mxu1 %vm1952_vm1, %v1951_v9 }
 0x35d   :  { %1646 = vmatprep.subr.bf16.mxu1 %v1951_v9 }
 0x360   :  { %1647 = vmatpush3.bf16.msra.mxu1 %v1868_v14 }
 0x361   :  { %1648 = vmatprep.subr.bf16.mxu1 %v1951_v9 }
 0x364   :  { %1649 = vmatpush3.bf16.msra.mxu1 %v1869_v15 }
 0x365   :  { %1650 = vmatprep.subr.bf16.mxu1 %v1951_v9 }
 0x368   :  { %1651 = vmatpush3.bf16.msra.mxu1 %v1870_v16 }
 0x369   :  { %1652 = vmatprep.subr.bf16.mxu1 %v1951_v9 }
 0x36c   :  { %1653 = vmatpush3.bf16.msra.mxu1 %v1871_v17 }
 0x36d   :  { %1654 = vmatprep.subr.bf16.mxu1 %v1951_v9 }
 0x370   :  { %1655 = vmatpush3.bf16.msra.mxu1 %v1872_v18 }
 0x371   :  { %1656 = vmatprep.subr.bf16.mxu1 %v1951_v9 }
 0x374   :  { %1657 = vmatpush3.bf16.msra.mxu1 %v1873_v19 }
 0x375   :  { %1658 = vmatprep.subr.bf16.mxu1 %v1951_v9  ;;  %v1546_v9 = vld [vmem:[%s2510_s10] ss:$0 sm:$0xff] }
 0x378   :  { %1659 = vmatpush3.bf16.msra.mxu1 %v1874_v20 }
 0x42e   :  { %v1282_v22 = vpop.f32.mrb[8].mxu1 }
 0x42f   :  { %v1283_v23 = vadd.f32 %v1537_v21, %v1282_v22  ;;  %v1642_v24 = vpop.f32.mrb[9].mxu1 }
 0x430   :  { %v1285_v25 = vpop.f32.mrb[10].mxu1 }
 0x431   :  { %v1286_v26 = vadd.f32 %v1537_v21, %v1285_v25  ;;  %v1643_v27 = vpop.f32.mrb[11].mxu1  ;;  %v1289_v28 = vmax.f32 %v1283_v23, 0.0 }
 0x433   :  { %v1290_v29 = vmax.f32 %v1286_v26, 0.0 }
 0x435   :  { %v1291_v30 = vpack.c.bf16 %v1290_v29, %v1289_v28 }
 0x437   :  { %1661 = vmatmul.mubr.bf16.vlgmr.msra.gmra.mrb[12].mxu1 %v1291_v30 }
 0x50a   :  { %v1397_v31 = vpop.f32.mrb[12].mxu1 }
 0x50b   :  { %v1398_v32 = vadd.f32 %v1546_v9, %v1397_v31  ;;  %v1662_v33 = vpop.f32.mrb[13].mxu1 }
 0x50c   :  { %v1400_v34 = vpop.f32.mrb[14].mxu1 }
 0x50d   :  { %1404 = vst [vmem:[%s2511_s11] sm:$0xff] %v1398_v32  ;;  %v1401_v35 = vadd.f32 %v1546_v9, %v1400_v34  ;;  %v1663_v36 = vpop.f32.mrb[15].mxu1 }
 0x50f   :  { %1405 = vst [vmem:[%s2511_s11 + $0x8] sm:$0xff] %v1401_v35 }
 0x510   :  { %1410 = vsyncpa [#allocation3], 1 }
 0x511   :  { %1411 = vsyncpa [#allocation5], 1 }

</bundles_post_ra>
